<compile_context>
chip_gen: v6e
topology: v6e:2x2x1
jax: 0.10.0
libtpu: 0.0.40
codegen_flags: <defaults>
</compile_context>

<pallas_src>
import math
import numpy as np
import jax
import jax.numpy as jnp
from jax.experimental import pallas as pl
from jax.experimental.pallas import tpu as pltpu

GROUP = 128  # W4 quantization group size (W4A16B16O16Linear group_size=128)


def _round_up(x, m):
    return (x + m - 1) // m * m


# ----------------------------------------------------------------------------
# Pallas kernels
# ----------------------------------------------------------------------------
def _qlinear_kernel(x_ref, wq_ref, s_ref, o_ref, acc_ref):
    # One (tm, tn) output tile accumulated over 128-wide K groups (grid axis 2).
    g = pl.program_id(2)

    @pl.when(g == 0)
    def _():
        acc_ref[...] = jnp.zeros_like(acc_ref)

    xb = x_ref[...]                                              # (tm, GROUP) bf16
    # int4 values in [-8, 7] are exact in bf16; go via f32 for a safe convert.
    wb = wq_ref[...].astype(jnp.float32).astype(jnp.bfloat16)    # (tn, GROUP)
    part = jax.lax.dot_general(xb, wb, (((1,), (1,)), ((), ())),
                               preferred_element_type=jnp.float32)  # (tm, tn)
    scale = s_ref[pl.ds(g, 1), :]                                # (1, tn)
    acc_ref[...] += part * scale

    @pl.when(g == pl.num_programs(2) - 1)
    def _():
        o_ref[...] = acc_ref[...]


def _causal_conv_silu_kernel(xp_ref, w_ref, b_ref, o_ref):
    # depthwise causal conv1d + SiLU on a (channel-tile, L) block.
    td, L = o_ref.shape[1], o_ref.shape[2]
    W = w_ref.shape[1]
    acc = jnp.zeros((td, L), jnp.float32) + b_ref[...]
    for k in range(W):                      # W = d_conv (4) taps, static unroll
        acc = acc + w_ref[:, k:k + 1] * xp_ref[0, :, k:k + L]
    o_ref[0] = acc * (1.0 / (1.0 + jnp.exp(-acc)))               # SiLU


def _selective_scan_kernel(u_ref, z_ref, dt_ref, B_ref, C_ref, dtw_ref, A_ref,
                           Dv_ref, bias_ref, o_ref, h_ref, delta_ref):
    # selective_scan_fn(x, dt, A, B, C, D, z=z, delta_bias=dt_bias,
    #                   delta_softplus=True) with dt_proj fused in.
    c = pl.program_id(1)
    TC = o_ref.shape[-1]

    @pl.when(c == 0)
    def _():
        h_ref[...] = jnp.zeros_like(h_ref)   # reset SSM state per batch element

    # fused dt_proj (+ delta_bias, softplus) for the whole chunk: (D, TC)
    dr = jax.lax.dot_general(dtw_ref[...], dt_ref[0], (((1,), (1,)), ((), ())),
                             preferred_element_type=jnp.float32) + bias_ref[...]
    delta_ref[...] = jnp.maximum(dr, 0.0) + jnp.log(1.0 + jnp.exp(-jnp.abs(dr)))

    A = A_ref[...]           # (D, N)
    Dv = Dv_ref[...]         # (D, 1)

    def step(t, h):
        d_t = delta_ref[:, pl.ds(t, 1)]          # (D, 1)
        u_t = u_ref[0, :, pl.ds(t, 1)]           # (D, 1)
        B_t = B_ref[0, pl.ds(t, 1), :]           # (1, N)
        C_t = C_ref[0, pl.ds(t, 1), :]           # (1, N)
        h = jnp.exp(d_t * A) * h + (d_t * u_t) * B_t
        y_t = jnp.sum(h * C_t, axis=1, keepdims=True) + Dv * u_t
        o_ref[0, :, pl.ds(t, 1)] = y_t           # direct column store
        return h

    h_ref[...] = jax.lax.fori_loop(0, TC, step, h_ref[...])

    # gate: y * silu(z)
    zv = z_ref[0]
    o_ref[0] = o_ref[0] * (zv * (1.0 / (1.0 + jnp.exp(-zv))))


# ----------------------------------------------------------------------------
# Pallas wrappers
# ----------------------------------------------------------------------------
def qlinear(x, wq, scales_t, n_out):
    """W4A16 linear: x (M, K) fp32 -> (M, n_out) fp32.

    wq:       (N_pad, K_pad) int8 holding int4 values in [-8, 7]
    scales_t: (K_pad // GROUP, N_pad) fp32 per-(group, out-feature) scales
    """
    M, K = x.shape
    N_pad, K_pad = wq.shape
    G = K_pad // GROUP
    tm = min(256, _round_up(M, 16))
    tn = 256 if N_pad % 256 == 0 else 128
    M_pad = _round_up(M, tm)
    xp = jnp.pad(x, ((0, M_pad - M), (0, K_pad - K))).astype(jnp.bfloat16)

    out = pl.pallas_call(
        _qlinear_kernel,
        out_shape=jax.ShapeDtypeStruct((M_pad, N_pad), jnp.float32),
        grid=(M_pad // tm, N_pad // tn, G),
        in_specs=[
            pl.BlockSpec((tm, GROUP), lambda i, j, g: (i, g)),   # activations
            pl.BlockSpec((tn, GROUP), lambda i, j, g: (j, g)),   # int4 weights
            pl.BlockSpec((G, tn), lambda i, j, g: (0, j)),       # group scales
        ],
        out_specs=pl.BlockSpec((tm, tn), lambda i, j, g: (i, j)),
        scratch_shapes=[pltpu.VMEM((tm, tn), jnp.float32)],
        compiler_params=pltpu.CompilerParams(
            dimension_semantics=("parallel", "parallel", "arbitrary")),
    )(xp, wq, scales_t)
    return out[:M, :n_out]


def causal_conv_silu(x, conv_w, conv_b):
    Bb, D, L = x.shape
    W = conv_w.shape[1]
    xp = jnp.pad(x, ((0, 0), (0, 0), (W - 1, 0)))
    Lp = L + W - 1
    td = D if D <= 256 else (256 if D % 256 == 0 else D)
    # TODO(synk): also chunk over L (carrying d_conv-1 history lanes) for very long seqlen.
    return pl.pallas_call(
        _causal_conv_silu_kernel,
        out_shape=jax.ShapeDtypeStruct((Bb, D, L), jnp.float32),
        grid=(Bb, D // td),
        in_specs=[
            pl.BlockSpec((1, td, Lp), lambda b, d: (b, d, 0)),
            pl.BlockSpec((td, W), lambda b, d: (d, 0)),
            pl.BlockSpec((td, 1), lambda b, d: (d, 0)),
        ],
        out_specs=pl.BlockSpec((1, td, L), lambda b, d: (b, d, 0)),
        compiler_params=pltpu.CompilerParams(
            dimension_semantics=("parallel", "parallel")),
    )(xp, conv_w, conv_b.reshape(D, 1))


def selective_scan(u, z, dt, Bmat, Cmat, dt_w, A, Dvec, dt_bias):
    Bb, D, L = u.shape
    N = A.shape[1]
    R = dt.shape[-1]
    if L <= 128:
        TC, Lp = L, L
    else:
        TC = 128
        Lp = _round_up(L, TC)
        u = jnp.pad(u, ((0, 0), (0, 0), (0, Lp - L)))
        z = jnp.pad(z, ((0, 0), (0, 0), (0, Lp - L)))
        dt = jnp.pad(dt, ((0, 0), (0, Lp - L), (0, 0)))
        Bmat = jnp.pad(Bmat, ((0, 0), (0, Lp - L), (0, 0)))
        Cmat = jnp.pad(Cmat, ((0, 0), (0, Lp - L), (0, 0)))

    y = pl.pallas_call(
        _selective_scan_kernel,
        out_shape=jax.ShapeDtypeStruct((Bb, D, Lp), jnp.float32),
        grid=(Bb, Lp // TC),
        in_specs=[
            pl.BlockSpec((1, D, TC), lambda b, c: (b, 0, c)),    # u (conv output)
            pl.BlockSpec((1, D, TC), lambda b, c: (b, 0, c)),    # z (gate)
            pl.BlockSpec((1, TC, R), lambda b, c: (b, c, 0)),    # dt (pre dt_proj)
            pl.BlockSpec((1, TC, N), lambda b, c: (b, c, 0)),    # B
            pl.BlockSpec((1, TC, N), lambda b, c: (b, c, 0)),    # C
            pl.BlockSpec((D, R), lambda b, c: (0, 0)),           # dt_proj weight
            pl.BlockSpec((D, N), lambda b, c: (0, 0)),           # A
            pl.BlockSpec((D, 1), lambda b, c: (0, 0)),           # D (skip)
            pl.BlockSpec((D, 1), lambda b, c: (0, 0)),           # dt bias
        ],
        out_specs=pl.BlockSpec((1, D, TC), lambda b, c: (b, 0, c)),
        scratch_shapes=[pltpu.VMEM((D, N), jnp.float32),         # persistent SSM state
                        pltpu.VMEM((D, TC), jnp.float32)],       # per-chunk delta
        compiler_params=pltpu.CompilerParams(
            dimension_semantics=("parallel", "arbitrary")),
    )(u, z, dt, Bmat, Cmat, dt_w, A, Dvec.reshape(D, 1), dt_bias.reshape(D, 1))
    return y[:, :, :L]


# ----------------------------------------------------------------------------
# Hadamard (fast Walsh-Hadamard transform, Sylvester order, unnormalized)
# ----------------------------------------------------------------------------
def _fwht(x):
    M, K = x.shape
    assert K > 0 and (K & (K - 1)) == 0, "Hadamard size must be a power of two"
    h = 1
    y = x
    while h < K:
        y = y.reshape(M, K // (2 * h), 2, h)
        a = y[:, :, 0, :]
        b = y[:, :, 1, :]
        y = jnp.stack([a + b, a - b], axis=2)
        h *= 2
    return y.reshape(M, K)


def hadamard_matrix(n):
    assert n > 0 and (n & (n - 1)) == 0
    H = np.array([[1.0]], dtype=np.float64)
    while H.shape[0] < n:
        H = np.block([[H, H], [H, -H]])
    return jnp.asarray(H / math.sqrt(n), dtype=jnp.float32)


# ----------------------------------------------------------------------------
# Parameter construction (deterministic, synthetic; mirrors __init__ shapes)
# ----------------------------------------------------------------------------
def quantize_w4(key, out_features, in_features, group_size=GROUP):
    # synthetic fp weight -> symmetric int4 with per-(row, 128-group) scales.
    # Stored padded: wq (N_pad, K_pad) int8, scales_t (G, N_pad) fp32.
    w = jax.random.normal(key, (out_features, in_features), jnp.float32)
    w = w * (1.0 / math.sqrt(in_features))
    G = -(-in_features // group_size)
    K_pad = G * group_size
    wp = jnp.pad(w, ((0, 0), (0, K_pad - in_features)))
    wg = wp.reshape(out_features, G, group_size)
    scale = jnp.maximum(jnp.max(jnp.abs(wg), axis=-1), 1e-6) / 7.0       # (N, G)
    wq = jnp.clip(jnp.round(wg / scale[:, :, None]), -8, 7).astype(jnp.int8)
    wq = wq.reshape(out_features, K_pad)
    N_pad = _round_up(out_features, 128)
    wq = jnp.pad(wq, ((0, N_pad - out_features), (0, 0)))
    scales_t = jnp.pad(scale.T, ((0, 0), (0, N_pad - out_features)))     # (G, N_pad)
    return wq, scales_t


def init_params(key, d_model, d_state=16, d_conv=4, expand=2, dt_rank="auto",
                dt_min=0.001, dt_max=0.1, dt_scale=1.0, dt_init_floor=1e-4):
    d_inner = int(expand * d_model)
    dt_rank = math.ceil(d_model / 16) if dt_rank == "auto" else dt_rank
    ks = jax.random.split(key, 8)
    in_wq, in_s = quantize_w4(ks[0], 2 * d_inner, d_model)
    x_wq, x_s = quantize_w4(ks[1], dt_rank + 2 * d_state, d_inner)
    out_wq, out_s = quantize_w4(ks[2], d_model, d_inner)
    kconv = 1.0 / math.sqrt(d_conv)
    conv_w = jax.random.uniform(ks[3], (d_inner, d_conv), jnp.float32, -kconv, kconv)
    conv_b = jax.random.uniform(ks[4], (d_inner,), jnp.float32, -kconv, kconv)
    dt_init_std = dt_rank ** (-0.5) * dt_scale
    dt_w = jax.random.uniform(ks[5], (d_inner, dt_rank), jnp.float32,
                              -dt_init_std, dt_init_std)
    dt = jnp.exp(jax.random.uniform(ks[6], (d_inner,), jnp.float32)
                 * (math.log(dt_max) - math.log(dt_min)) + math.log(dt_min))
    dt = jnp.maximum(dt, dt_init_floor)
    dt_bias = dt + jnp.log(-jnp.expm1(-dt))          # inverse-softplus init
    A = jnp.tile(jnp.arange(1, d_state + 1, dtype=jnp.float32)[None, :], (d_inner, 1))
    return dict(d_model=d_model, d_state=d_state, d_conv=d_conv, d_inner=d_inner,
                dt_rank=dt_rank, in_wq=in_wq, in_s=in_s, x_wq=x_wq, x_s=x_s,
                out_wq=out_wq, out_s=out_s, conv_w=conv_w, conv_b=conv_b,
                dt_w=dt_w, dt_bias=dt_bias, A_log=jnp.log(A),
                D=jnp.ones((d_inner,), jnp.float32))


# ----------------------------------------------------------------------------
# Forward pass (hot paths in Pallas, thin JAX glue)
# ----------------------------------------------------------------------------
def w4a16_qmamba_forward(params, hidden_states):
    B, L, Dm = hidden_states.shape
    d_inner, d_state = params["d_inner"], params["d_state"]
    dt_rank = params["dt_rank"]

    # in_proj.to_seqlen_last: (B, L, D) -> (B, 2*d_inner, L)
    xz = qlinear(hidden_states.reshape(B * L, Dm), params["in_wq"], params["in_s"],
                 2 * d_inner)
    xz = xz.reshape(B, L, 2 * d_inner).transpose(0, 2, 1)
    x, z = xz[:, :d_inner, :], xz[:, d_inner:, :]

    # causal depthwise conv1d + SiLU
    x = causal_conv_silu(x, params["conv_w"], params["conv_b"])

    # x_proj: (B*L, d_inner) -> [dt | B | C]
    x_flat = x.transpose(0, 2, 1).reshape(B * L, d_inner)
    x_dbl = qlinear(x_flat, params["x_wq"], params["x_s"], dt_rank + 2 * d_state)
    dt = x_dbl[:, :dt_rank].reshape(B, L, dt_rank)
    Bmat = x_dbl[:, dt_rank:dt_rank + d_state].reshape(B, L, d_state)
    Cmat = x_dbl[:, dt_rank + d_state:].reshape(B, L, d_state)

    # selective scan (dt_proj + delta_bias + softplus fused), gated by silu(z)
    A = -jnp.exp(params["A_log"])
    y = selective_scan(x, z, dt, Bmat, Cmat, params["dt_w"], A,
                       params["D"], params["dt_bias"])

    # Hadamard (FWHT, no dense matrix) + W4A16 out_proj
    y_flat = y.transpose(0, 2, 1).reshape(B * L, d_inner)
    y_had = _fwht(y_flat) * (1.0 / math.sqrt(d_inner))
    out = qlinear(y_had, params["out_wq"], params["out_s"], Dm)
    return out.reshape(B, L, Dm)


# ----------------------------------------------------------------------------
# Pure-JAX reference (same grouped-W4, bf16-matmul semantics; dense Hadamard)
# ----------------------------------------------------------------------------
def ref_qlinear(x, wq, scales_t, n_out):
    M, K = x.shape
    N_pad, K_pad = wq.shape
    G = K_pad // GROUP
    xp = jnp.pad(x, ((0, 0), (0, K_pad - K))).astype(jnp.bfloat16)
    wb = wq.astype(jnp.bfloat16)
    acc = jnp.zeros((M, N_pad), jnp.float32)
    for g in range(G):
        part = jnp.dot(xp[:, g * GROUP:(g + 1) * GROUP],
                       wb[:, g * GROUP:(g + 1) * GROUP].T,
                       preferred_element_type=jnp.float32)
        acc = acc + part * scales_t[g][None, :]
    return acc[:, :n_out]


def reference_forward(params, hidden_states):
    B, L, Dm = hidden_states.shape
    d_inner, d_state = params["d_inner"], params["d_state"]
    d_conv, dt_rank = params["d_conv"], params["dt_rank"]
    hp = jax.lax.Precision.HIGHEST

    xz = ref_qlinear(hidden_states.reshape(B * L, Dm), params["in_wq"],
                     params["in_s"], 2 * d_inner)
    xz = xz.reshape(B, L, 2 * d_inner).transpose(0, 2, 1)
    x, z = xz[:, :d_inner, :], xz[:, d_inner:, :]

    xp = jnp.pad(x, ((0, 0), (0, 0), (d_conv - 1, 0)))
    acc = params["conv_b"][None, :, None]
    for k in range(d_conv):
        acc = acc + params["conv_w"][None, :, k:k + 1] * xp[:, :, k:k + L]
    x = acc * jax.nn.sigmoid(acc)

    x_flat = x.transpose(0, 2, 1).reshape(B * L, d_inner)
    x_dbl = ref_qlinear(x_flat, params["x_wq"], params["x_s"], dt_rank + 2 * d_state)
    dt = x_dbl[:, :dt_rank]
    Bmat = x_dbl[:, dt_rank:dt_rank + d_state].reshape(B, L, d_state)
    Cmat = x_dbl[:, dt_rank + d_state:].reshape(B, L, d_state)

    delta = jnp.dot(dt, params["dt_w"].T, precision=hp)
    delta = delta.reshape(B, L, d_inner).transpose(0, 2, 1)
    delta = jax.nn.softplus(delta + params["dt_bias"][None, :, None])
    A = -jnp.exp(params["A_log"])
    h = jnp.zeros((B, d_inner, d_state), jnp.float32)
    ys = []
    for t in range(L):
        dA = jnp.exp(delta[:, :, t:t + 1] * A[None])
        dBu = delta[:, :, t:t + 1] * x[:, :, t:t + 1] * Bmat[:, t, :][:, None, :]
        h = dA * h + dBu
        ys.append(jnp.sum(h * Cmat[:, t, :][:, None, :], axis=-1)
                  + params["D"][None, :] * x[:, :, t])
    y = jnp.stack(ys, axis=-1)
    y = y * (z * jax.nn.sigmoid(z))

    y_flat = y.transpose(0, 2, 1).reshape(B * L, d_inner)
    H = hadamard_matrix(d_inner)
    y_had = jnp.dot(y_flat, H, precision=hp)
    out = ref_qlinear(y_had, params["out_wq"], params["out_s"], Dm)
    return out.reshape(B, L, Dm)


if __name__ == "__main__":
    d_model, d_state, d_conv, expand = 32, 16, 4, 2
    batch, seqlen = 2, 8
    key = jax.random.PRNGKey(0)
    pkey, xkey = jax.random.split(key)
    params = init_params(pkey, d_model, d_state, d_conv, expand)
    hidden_states = jax.random.normal(xkey, (batch, seqlen, d_model), jnp.float32)

    out = jax.block_until_ready(w4a16_qmamba_forward(params, hidden_states))
    assert out.shape == hidden_states.shape

    ref = jax.block_until_ready(reference_forward(params, hidden_states))
    if not np.allclose(np.asarray(out), np.asarray(ref), rtol=2e-2, atol=2e-2):
        diff = np.max(np.abs(np.asarray(out) - np.asarray(ref)))
        raise AssertionError(f"Pallas output mismatch vs JAX reference (max abs diff {diff})")
    print("KERNEL_OK")
</pallas_src>

<mosaic_0001>
module attributes {stable_mosaic.version = 11 : i64} {
  func.func @_qlinear_kernel(%arg0: i32, %arg1: i32, %arg2: i32, %arg3: memref<16x128xbf16, #tpu.memory_space<vmem>>, %arg4: memref<128x128xi8, #tpu.memory_space<vmem>>, %arg5: memref<1x128xf32, #tpu.memory_space<vmem>>, %arg6: memref<16x128xf32, #tpu.memory_space<vmem>>, %arg7: memref<16x128xf32, #tpu.memory_space<vmem>>) attributes {dimension_semantics = [#tpu.dimension_semantics<parallel>, #tpu.dimension_semantics<parallel>, #tpu.dimension_semantics<arbitrary>], iteration_bounds = array<i64: 1, 1, 1>, scalar_prefetch = 0 : i64, scratch_operands = 1 : i64, tpu.core_type = #tpu.core_type<tc>, window_params = [{transform_indices = @transform_0, window_bounds = array<i64: 16, 128>}, {transform_indices = @transform_1, window_bounds = array<i64: 128, 128>}, {transform_indices = @transform_2, window_bounds = array<i64: 1, 128>}, {transform_indices = @transform_3, window_bounds = array<i64: 16, 128>}]} {
    %c0_i32 = arith.constant 0 : i32
    %0 = arith.cmpi eq, %arg2, %c0_i32 : i32
    %1 = arith.extui %0 : i1 to i32
    %c0_i32_0 = arith.constant 0 : i32
    %2 = arith.cmpi ne, %1, %c0_i32_0 : i32
    scf.if %2 {
      %cst_11 = arith.constant 0.000000e+00 : f32
      %18 = vector.broadcast %cst_11 : f32 to vector<16x128xf32>
      %c0_12 = arith.constant 0 : index
      %c0_13 = arith.constant 0 : index
      %19 = vector.load %arg7[%c0_12, %c0_13] : memref<16x128xf32, #tpu.memory_space<vmem>>, vector<16x128xf32>
      tpu.vector_store %arg7[%c0_12, %c0_13], %18 {strides = array<i32>} : memref<16x128xf32, #tpu.memory_space<vmem>>, vector<16x128xf32>,
    } else {
    }
    %c0 = arith.constant 0 : index
    %c0_1 = arith.constant 0 : index
    %3 = vector.load %arg3[%c0, %c0_1] : memref<16x128xbf16, #tpu.memory_space<vmem>>, vector<16x128xbf16>
    %c0_2 = arith.constant 0 : index
    %c0_3 = arith.constant 0 : index
    %4 = vector.load %arg4[%c0_2, %c0_3] : memref<128x128xi8, #tpu.memory_space<vmem>>, vector<128x128xi8>
    %5 = arith.sitofp %4 : vector<128x128xi8> to vector<128x128xf32>
    %6 = arith.truncf %5 : vector<128x128xf32> to vector<128x128xbf16>
    %cst = arith.constant dense<0.000000e+00> : vector<16x128xf32>
    %7 = tpu.matmul %3, %6, %cst {dimension_numbers = #tpu.dot_dimension_numbers<[1], [1], [0], [0], [0, 0, 1, 0], [], []>} : vector<16x128xbf16>, vector<128x128xbf16>, vector<16x128xf32> -> vector<16x128xf32>
    %8 = arith.index_cast %arg2 : i32 to index
    %c0_4 = arith.constant 0 : index
    %9 = vector.load %arg5[%8, %c0_4] : memref<1x128xf32, #tpu.memory_space<vmem>>, vector<1x128xf32>
    %c0_5 = arith.constant 0 : index
    %c0_6 = arith.constant 0 : index
    %10 = vector.load %arg7[%c0_5, %c0_6] : memref<16x128xf32, #tpu.memory_space<vmem>>, vector<16x128xf32>
    %11 = vector.broadcast %9 : vector<1x128xf32> to vector<16x128xf32>
    %12 = arith.mulf %7, %11 : vector<16x128xf32>
    %13 = arith.addf %10, %12 : vector<16x128xf32>
    %c0_7 = arith.constant 0 : index
    %c0_8 = arith.constant 0 : index
    %14 = vector.load %arg7[%c0_7, %c0_8] : memref<16x128xf32, #tpu.memory_space<vmem>>, vector<16x128xf32>
    tpu.vector_store %arg7[%c0_7, %c0_8], %13 {strides = array<i32>} : memref<16x128xf32, #tpu.memory_space<vmem>>, vector<16x128xf32>,
    %c0_i32_9 = arith.constant 0 : i32
    %15 = arith.cmpi eq, %arg2, %c0_i32_9 : i32
    %16 = arith.extui %15 : i1 to i32
    %c0_i32_10 = arith.constant 0 : i32
    %17 = arith.cmpi ne, %16, %c0_i32_10 : i32
    scf.if %17 {
      %c0_11 = arith.constant 0 : index
      %c0_12 = arith.constant 0 : index
      %18 = vector.load %arg7[%c0_11, %c0_12] : memref<16x128xf32, #tpu.memory_space<vmem>>, vector<16x128xf32>
      %c0_13 = arith.constant 0 : index
      %c0_14 = arith.constant 0 : index
      %19 = vector.load %arg6[%c0_13, %c0_14] : memref<16x128xf32, #tpu.memory_space<vmem>>, vector<16x128xf32>
      tpu.vector_store %arg6[%c0_13, %c0_14], %18 {strides = array<i32>} : memref<16x128xf32, #tpu.memory_space<vmem>>, vector<16x128xf32>,
    } else {
    }
    return
  }
  func.func @transform_0(%arg0: i32, %arg1: i32, %arg2: i32) -> (i32, i32) {
    %c0_i32 = arith.constant 0 : i32
    return %arg0, %arg2 : i32, i32
  }
  func.func @transform_1(%arg0: i32, %arg1: i32, %arg2: i32) -> (i32, i32) {
    %c0_i32 = arith.constant 0 : i32
    return %arg1, %arg2 : i32, i32
  }
  func.func @transform_2(%arg0: i32, %arg1: i32, %arg2: i32) -> (i32, i32) {
    %c0_i32 = arith.constant 0 : i32
    %c0_i32_0 = arith.constant 0 : i32
    return %c0_i32, %arg1 : i32, i32
  }
  func.func @transform_3(%arg0: i32, %arg1: i32, %arg2: i32) -> (i32, i32) {
    %c0_i32 = arith.constant 0 : i32
    return %arg0, %arg1 : i32, i32
  }
}

</mosaic_0001>

<bundles_post_ra>
// kernel: tpu_custom_call.1
= control target key start
LH: loop header
LB: loop body
LE: loop exit
PB: predicated region body
PF: predicated region fallthrough
CT: control target
= control target key end

     0   :  { %8 = vsyncpa [#allocation4], 0  ;;  %s305_s0 = inlined_call_operand.hbm [shape: bf16[16,128], index: 0, kind: input, shape index: {}]   ;;  %s306_s1 = inlined_call_operand.hbm [shape: s8[128,128], index: 1, kind: input, shape index: {}]   ;;  %s307_s2 = inlined_call_operand.vmem [shape: f32[1,128], index: 2, kind: input, shape index: {}]   ;;  %s308_s3 = inlined_call_operand.hbm [shape: f32[16,128], index: 3, kind: output, shape index: {}]  }
   0x1   :  { %9 = vsyncpa [#allocation7], 0 }
   0x2   :  { %10 = vsyncpa [#allocation5], 0  ;;  %s258_s12 = smov [#allocation3]  }
   0x3   :  { %s16_s13 = sshll.u32 %s258_s12, 4  ;;  %s17_s13 = int_to_ptr.vmem [resolvable:$true] %s16_s13 }
   0x4   :  { %s200_s14 = scalar_lea.vmem %s17_s13, 128  ;;  %p205_p1 = scmp.lt.s32.totalorder %s17_s13, %s17_s13 }
   0x5   :  { %p201_p0 = scmp.ne.s32.totalorder %s17_s13, %s200_s14  ;;  %p206_p2 = scmp.lt.s32.totalorder %s200_s14, %s200_s14 }
   0x7   :  { %p207_p3 = por %p206_p2, %p205_p1 }
   0x9   :  { %p208_p4 = pnand %p207_p3, %p201_p0 }
   0xb   :  { %211 = shalt.err (!%p208_p4)
}
   0xc   :  { %s259_s15 = smov 64   ;;  %s260_s16 = smov 4  }
   0xd   :  { %22 = dma.hbm_to_vmem [thread:$0]  %s305_s0, 128, %s17_s13, [#allocation4], %s259_s15, %s259_s15, %s260_s16  }
   0xe   :  { %s261_s19 = smov [#allocation6]  }
   0xf   :  { %s28_s20 = sshll.u32 %s261_s19, 4  ;;  %s29_s20 = int_to_ptr.vmem [resolvable:$true] %s28_s20 }
  0x10   :  { %s220_s21 = scalar_lea.vmem %s29_s20, 512  ;;  %p225_p6 = scmp.lt.s32.totalorder %s29_s20, %s29_s20 }
  0x11   :  { %p221_p5 = scmp.ne.s32.totalorder %s29_s20, %s220_s21  ;;  %p226_p7 = scmp.lt.s32.totalorder %s220_s21, %s220_s21 }
  0x13   :  { %p227_p8 = por %p226_p7, %p225_p6 }
  0x15   :  { %p228_p9 = pnand %p227_p8, %p221_p5 }
  0x17   :  { %231 = shalt.err (!%p228_p9)
}
  0x18   :  { %s262_s22 = smov 128   ;;  %s263_s23 = smov 8  }
  0x19   :  { %34 = dma.hbm_to_vmem [thread:$0]  %s306_s1, 512, %s29_s20, [#allocation7], %s262_s22, %s262_s22, %s263_s23  }
  0x1a   :  { %252 = dma.done.wait [#allocation4], 128  }
  0x1b   :  { %253 = vsyncadd [#allocation4], 4294967168 }
  0x1c   :  { %254 = dma.done.wait [#allocation7], 512  }
  0x1d   :  { %255 = vsyncadd [#allocation7], 4294966784  ;;  %v264_v0 = vmov 0.0   ;;  %vm265_vm0 = vmmov 0   ;;  %v55_v1 = vld [vmem:[#allocation6 + $0x18] sm:$0xff]  ;;  %v54_v4 = vld [vmem:[#allocation6 + $0x10] sm:$0xff] }
  0x1e   :  { %162 = vmatprep.subr.bf16.mxu0 %v264_v0  ;;  %178 = vmatprep.mubr.msk.bf16.mxu0 %vm265_vm0, %v264_v0  ;;  %v63_v2 = vunpack.c.h.s8.bf16 %v55_v1  ;;  %v62_v3 = vunpack.c.l.s8.bf16 %v55_v1  ;;  %v61_v5 = vunpack.c.h.s8.bf16 %v54_v4  ;;  %v60_v6 = vunpack.c.l.s8.bf16 %v54_v4  ;;  %v53_v7 = vld [vmem:[#allocation6 + $0x8] sm:$0xff]  ;;  %v52_v10 = vld [vmem:[#allocation6] sm:$0xff]  ;;  %v191_v13 = vld [vmem:[#allocation3] sm:$0xff]   ;;  %s266_s26 = smov [#allocation8]  }
  0x1f   :  { %v59_v8 = vunpack.c.h.s8.bf16 %v53_v7  ;;  %v58_v9 = vunpack.c.l.s8.bf16 %v53_v7  ;;  %v57_v11 = vunpack.c.h.s8.bf16 %v52_v10  ;;  %v56_v12 = vunpack.c.l.s8.bf16 %v52_v10  ;;  %v152_v14 = vld [vmem:[%s307_s2] ss:$0 sm:$0xff]  ;;  %s138_s27 = sshll.u32 %s266_s26, 4  ;;  %s139_s27 = int_to_ptr.vmem [resolvable:$true] %s138_s27 }
  0x20   :  { %163 = vmatpush3.bf16.xpose.msra.mxu0 %v63_v2  ;;  %s232_s28 = scalar_lea.vmem %s139_s27, 256  ;;  %p237_p11 = scmp.lt.s32.totalorder %s139_s27, %s139_s27 }
  0x21   :  { %164 = vmatprep.subr.bf16.mxu0 %v264_v0  ;;  %p233_p10 = scmp.ne.s32.totalorder %s139_s27, %s232_s28  ;;  %p238_p12 = scmp.lt.s32.totalorder %s232_s28, %s232_s28 }
  0x23   :  { %p239_p13 = por %p238_p12, %p237_p11 }
  0x25   :  { %p240_p0 = pnand %p239_p13, %p233_p10 }
  0x28   :  { %165 = vmatpush3.bf16.xpose.msra.mxu0 %v62_v3 }
  0x29   :  { %166 = vmatprep.subr.bf16.mxu0 %v264_v0 }
  0x30   :  { %167 = vmatpush3.bf16.xpose.msra.mxu0 %v61_v5 }
  0x31   :  { %168 = vmatprep.subr.bf16.mxu0 %v264_v0 }
  0x38   :  { %169 = vmatpush3.bf16.xpose.msra.mxu0 %v60_v6 }
  0x39   :  { %170 = vmatprep.subr.bf16.mxu0 %v264_v0 }
  0x40   :  { %171 = vmatpush3.bf16.xpose.msra.mxu0 %v59_v8 }
  0x41   :  { %172 = vmatprep.subr.bf16.mxu0 %v264_v0 }
  0x48   :  { %173 = vmatpush3.bf16.xpose.msra.mxu0 %v58_v9 }
  0x49   :  { %174 = vmatprep.subr.bf16.mxu0 %v264_v0 }
  0x50   :  { %175 = vmatpush3.bf16.xpose.msra.mxu0 %v57_v11 }
  0x51   :  { %176 = vmatprep.subr.bf16.mxu0 %v264_v0 }
  0x58   :  { %177 = vmatpush3.bf16.xpose.msra.mxu0 %v56_v12 }
  0x5f   :  { %179 = vmatmul.mubr.bf16.vlgmr.msra.gmra.mxu0 %v191_v13 }
 0x11f   :  { %v104_v15 = vpop.f32.mrf.mxu0 }
 0x120   :  { %v120_v16 = vmul.f32 %v152_v14, %v104_v15 }
 0x121   :  { %v180_v17 = vpop.f32.mrf.mxu0 }
 0x122   :  { %131 = vst [vmem:[#allocation8] sm:$0xff] %v120_v16 }
 0x123   :  { %v107_v18 = vpop.f32.mrf.mxu0 }
 0x124   :  { %v121_v19 = vmul.f32 %v152_v14, %v107_v18 }
 0x125   :  { %v181_v20 = vpop.f32.mrf.mxu0 }
 0x126   :  { %132 = vst [vmem:[#allocation8 + $0x8] sm:$0xff] %v121_v19 }
 0x127   :  { %243 = shalt.err (!%p240_p0)
}
 0x128   :  { %144 = dma.vmem_to_hbm [thread:$0]  %s139_s27, 256, %s308_s3, [#allocation5], %s262_s22, %s262_s22, %s263_s23  }
 0x129   :  { %256 = dma.done.wait [#allocation5], 256  }
 0x12a   :  { %257 = vsyncadd [#allocation5], 4294967040 }
 0x12b   :  { %148 = vsyncpa [#allocation4], 1 }
 0x12c   :  { %149 = vsyncpa [#allocation7], 1 }
 0x12d   :  { %150 = vsyncpa [#allocation5], 1 }

</bundles_post_ra>
